<compile_context>
chip_gen: v7x
topology: tpu7x:2x2x1
jax: 0.10.0
libtpu: 0.0.40
codegen_flags: <defaults>
</compile_context>

<pallas_src>
import jax
import jax.numpy as jnp
from jax.experimental import pallas as pl
from jax.experimental.pallas import tpu as pltpu


def _round_up(n: int, m: int) -> int:
    return ((n + m - 1) // m) * m


def mlp_softmax_kernel(x_ref, w1_ref, b1_ref, w2_ref, b2_ref, o_ref):
    # fc1 + ReLU  (tall-M matmul: K=31 underfills the MXU, M amortizes weight push/drain)
    x = x_ref[...]
    h = jnp.dot(x, w1_ref[...], preferred_element_type=jnp.float32) + b1_ref[...]
    h = jnp.maximum(h, 0.0)
    # fc2
    logits = jnp.dot(h, w2_ref[...], preferred_element_type=jnp.float32) + b2_ref[...]
    # 2-class softmax via the sigmoid identity: no cross-lane max/sum on a 2-wide axis,
    # one exp per row, numerically equivalent to max-subtracted softmax.
    d = logits[:, 1:2] - logits[:, 0:1]          # (TB, 1)
    p1 = 1.0 / (1.0 + jnp.exp(-d))               # sigmoid
    o_ref[...] = jnp.concatenate([1.0 - p1, p1], axis=-1).astype(o_ref.dtype)


def txt_vis_net_forward(x, w1, b1, w2, b2, *, tb: int = 512):
    """Fused MLP+softmax forward. Streams x in batch tiles of size `tb`."""
    B, f_in = x.shape
    hidden = w1.shape[1]
    n_out = w2.shape[1]

    # Batch tile: multiple of 8 (sublane requirement), no larger than the padded batch.
    # Default 512 rows: (512, 31) f32 pads lanes 31->128 => ~256 KiB per buffer, which
    # double-buffered fits comfortably inside the default scoped VMEM on v5e/v6e/v7x.
    tb = max(8, min(tb, _round_up(B, 8)))
    b_pad = _round_up(B, tb)
    if b_pad != B:
        x = jnp.pad(x, ((0, b_pad - B), (0, 0)))  # zero rows: harmless, sliced off below

    grid = (b_pad // tb,)

    cost = pl.CostEstimate(
        flops=2 * b_pad * (f_in * hidden + hidden * n_out),
        transcendentals=b_pad,  # one exp per row
        bytes_accessed=(
            b_pad * (f_in + n_out) * 4
            + (w1.size + b1.size + w2.size + b2.size) * 4
        ),
    )

    out = pl.pallas_call(
        mlp_softmax_kernel,
        out_shape=jax.ShapeDtypeStruct((b_pad, n_out), jnp.float32),
        grid=grid,
        in_specs=[
            pl.BlockSpec((tb, f_in), lambda i: (i, 0)),        # x: streamed per tile
            pl.BlockSpec((f_in, hidden), lambda i: (0, 0)),    # w1: resident
            pl.BlockSpec((1, hidden), lambda i: (0, 0)),       # b1: resident
            pl.BlockSpec((hidden, n_out), lambda i: (0, 0)),   # w2: resident
            pl.BlockSpec((1, n_out), lambda i: (0, 0)),        # b2: resident
        ],
        out_specs=pl.BlockSpec((tb, n_out), lambda i: (i, 0)),
        compiler_params=pltpu.CompilerParams(
            dimension_semantics=("parallel",),  # shard batch grid across TCs on v7x
        ),
        cost_estimate=cost,
    )(x, w1, b1, w2, b2)

    return out[:B]


def init_params(key):
    # Deterministic synthetic init; shapes follow TxtVisNet.__init__:
    #   fc1: Linear(31, 100), fc2: Linear(100, 2)
    k1, k2, k3, k4 = jax.random.split(key, 4)
    w1 = jax.random.normal(k1, (31, 100), jnp.float32) * 0.1
    b1 = jax.random.normal(k2, (1, 100), jnp.float32) * 0.1
    w2 = jax.random.normal(k3, (100, 2), jnp.float32) * 0.1
    b2 = jax.random.normal(k4, (1, 2), jnp.float32) * 0.1
    return w1, b1, w2, b2


def reference_forward(x, w1, b1, w2, b2):
    h = jnp.maximum(x @ w1 + b1, 0.0)
    logits = h @ w2 + b2
    return jax.nn.softmax(logits, axis=-1)


if __name__ == "__main__":
    key = jax.random.PRNGKey(0)
    kx, kp, kx2 = jax.random.split(key, 3)

    w1, b1, w2, b2 = init_params(kp)

    # Small, tile-aligned batch.
    B = 8
    x = jax.random.normal(kx, (B, 31), jnp.float32)
    out = jax.block_until_ready(txt_vis_net_forward(x, w1, b1, w2, b2))
    ref = reference_forward(x, w1, b1, w2, b2)
    assert out.shape == (B, 2)
    assert jnp.allclose(out, ref, atol=1e-5, rtol=1e-5)
    assert jnp.allclose(jnp.sum(out, axis=-1), jnp.ones((B,)), atol=1e-5)

    # Ragged batch (exercises the pad-and-slice path for B % TB != 0).
    B2 = 10
    x2 = jax.random.normal(kx2, (B2, 31), jnp.float32)
    out2 = jax.block_until_ready(txt_vis_net_forward(x2, w1, b1, w2, b2))
    ref2 = reference_forward(x2, w1, b1, w2, b2)
    assert out2.shape == (B2, 2)
    assert jnp.allclose(out2, ref2, atol=1e-5, rtol=1e-5)
    assert jnp.allclose(jnp.sum(out2, axis=-1), jnp.ones((B2,)), atol=1e-5)

    print("KERNEL_OK")
</pallas_src>

<mosaic_0001>
module attributes {stable_mosaic.version = 11 : i64} {
  func.func @mlp_softmax_kernel(%arg0: i32, %arg1: memref<8x31xf32, #tpu.memory_space<vmem>>, %arg2: memref<31x100xf32, #tpu.memory_space<vmem>>, %arg3: memref<1x100xf32, #tpu.memory_space<vmem>>, %arg4: memref<100x2xf32, #tpu.memory_space<vmem>>, %arg5: memref<1x2xf32, #tpu.memory_space<vmem>>, %arg6: memref<8x2xf32, #tpu.memory_space<vmem>>) attributes {dimension_semantics = [#tpu.dimension_semantics<parallel>], iteration_bounds = array<i64: 1>, scalar_prefetch = 0 : i64, scratch_operands = 0 : i64, tpu.core_type = #tpu.core_type<tc>, window_params = [{transform_indices = @transform_0, window_bounds = array<i64: 8, 31>}, {pipeline_mode = #tpu.pipeline_mode<synchronous>, transform_indices = @transform_1, window_bounds = array<i64: 31, 100>}, {pipeline_mode = #tpu.pipeline_mode<synchronous>, transform_indices = @transform_2, window_bounds = array<i64: 1, 100>}, {pipeline_mode = #tpu.pipeline_mode<synchronous>, transform_indices = @transform_3, window_bounds = array<i64: 100, 2>}, {pipeline_mode = #tpu.pipeline_mode<synchronous>, transform_indices = @transform_4, window_bounds = array<i64: 1, 2>}, {transform_indices = @transform_5, window_bounds = array<i64: 8, 2>}]} {
    %c0 = arith.constant 0 : index
    %c0_0 = arith.constant 0 : index
    %0 = vector.load %arg1[%c0, %c0_0] : memref<8x31xf32, #tpu.memory_space<vmem>>, vector<8x31xf32>
    %c0_1 = arith.constant 0 : index
    %c0_2 = arith.constant 0 : index
    %1 = vector.load %arg2[%c0_1, %c0_2] : memref<31x100xf32, #tpu.memory_space<vmem>>, vector<31x100xf32>
    %cst = arith.constant dense<0.000000e+00> : vector<8x100xf32>
    %2 = tpu.matmul %0, %1, %cst {dimension_numbers = #tpu.dot_dimension_numbers<[1], [0], [0], [1], [0, 0, 1, 1], [], []>} : vector<8x31xf32>, vector<31x100xf32>, vector<8x100xf32> -> vector<8x100xf32>
    %c0_3 = arith.constant 0 : index
    %c0_4 = arith.constant 0 : index
    %3 = vector.load %arg3[%c0_3, %c0_4] : memref<1x100xf32, #tpu.memory_space<vmem>>, vector<1x100xf32>
    %4 = vector.broadcast %3 : vector<1x100xf32> to vector<8x100xf32>
    %5 = arith.addf %2, %4 : vector<8x100xf32>
    %cst_5 = arith.constant 0.000000e+00 : f32
    %6 = vector.broadcast %cst_5 : f32 to vector<8x100xf32>
    %7 = arith.maximumf %5, %6 : vector<8x100xf32>
    %c0_6 = arith.constant 0 : index
    %c0_7 = arith.constant 0 : index
    %8 = vector.load %arg4[%c0_6, %c0_7] : memref<100x2xf32, #tpu.memory_space<vmem>>, vector<100x2xf32>
    %cst_8 = arith.constant dense<0.000000e+00> : vector<8x2xf32>
    %9 = tpu.matmul %7, %8, %cst_8 {dimension_numbers = #tpu.dot_dimension_numbers<[1], [0], [0], [1], [0, 0, 1, 1], [], []>} : vector<8x100xf32>, vector<100x2xf32>, vector<8x2xf32> -> vector<8x2xf32>
    %c0_9 = arith.constant 0 : index
    %c0_10 = arith.constant 0 : index
    %10 = vector.load %arg5[%c0_9, %c0_10] : memref<1x2xf32, #tpu.memory_space<vmem>>, vector<1x2xf32>
    %11 = vector.broadcast %10 : vector<1x2xf32> to vector<8x2xf32>
    %12 = arith.addf %9, %11 : vector<8x2xf32>
    %13 = vector.extract_strided_slice %12 {offsets = [0, 1], sizes = [8, 1], strides = [1, 1]} : vector<8x2xf32> to vector<8x1xf32>
    %14 = vector.extract_strided_slice %12 {offsets = [0, 0], sizes = [8, 1], strides = [1, 1]} : vector<8x2xf32> to vector<8x1xf32>
    %15 = arith.subf %13, %14 : vector<8x1xf32>
    %cst_11 = arith.constant 0.000000e+00 : f32
    %16 = vector.broadcast %cst_11 : f32 to vector<8x1xf32>
    %17 = arith.subf %16, %15 : vector<8x1xf32>
    %18 = math.exp %17 : vector<8x1xf32>
    %cst_12 = arith.constant 1.000000e+00 : f32
    %19 = vector.broadcast %cst_12 : f32 to vector<8x1xf32>
    %20 = arith.addf %19, %18 : vector<8x1xf32>
    %cst_13 = arith.constant 1.000000e+00 : f32
    %21 = vector.broadcast %cst_13 : f32 to vector<8x1xf32>
    %22 = arith.divf %21, %20 : vector<8x1xf32>
    %cst_14 = arith.constant 1.000000e+00 : f32
    %23 = vector.broadcast %cst_14 : f32 to vector<8x1xf32>
    %24 = arith.subf %23, %22 : vector<8x1xf32>
    %25 = tpu.concatenate %24, %22 in 1 : vector<8x1xf32>, vector<8x1xf32> -> vector<8x2xf32>
    %c0_15 = arith.constant 0 : index
    %c0_16 = arith.constant 0 : index
    %26 = vector.load %arg6[%c0_15, %c0_16] : memref<8x2xf32, #tpu.memory_space<vmem>>, vector<8x2xf32>
    tpu.vector_store %arg6[%c0_15, %c0_16], %25 {strides = array<i32>} : memref<8x2xf32, #tpu.memory_space<vmem>>, vector<8x2xf32>,
    return
  }
  func.func @transform_0(%arg0: i32) -> (i32, i32) {
    %c0_i32 = arith.constant 0 : i32
    %c0_i32_0 = arith.constant 0 : i32
    return %arg0, %c0_i32 : i32, i32
  }
  func.func @transform_1(%arg0: i32) -> (i32, i32) {
    %c0_i32 = arith.constant 0 : i32
    %c0_i32_0 = arith.constant 0 : i32
    %c0_i32_1 = arith.constant 0 : i32
    return %c0_i32, %c0_i32_0 : i32, i32
  }
  func.func @transform_2(%arg0: i32) -> (i32, i32) {
    %c0_i32 = arith.constant 0 : i32
    %c0_i32_0 = arith.constant 0 : i32
    %c0_i32_1 = arith.constant 0 : i32
    return %c0_i32, %c0_i32_0 : i32, i32
  }
  func.func @transform_3(%arg0: i32) -> (i32, i32) {
    %c0_i32 = arith.constant 0 : i32
    %c0_i32_0 = arith.constant 0 : i32
    %c0_i32_1 = arith.constant 0 : i32
    return %c0_i32, %c0_i32_0 : i32, i32
  }
  func.func @transform_4(%arg0: i32) -> (i32, i32) {
    %c0_i32 = arith.constant 0 : i32
    %c0_i32_0 = arith.constant 0 : i32
    %c0_i32_1 = arith.constant 0 : i32
    return %c0_i32, %c0_i32_0 : i32, i32
  }
  func.func @transform_5(%arg0: i32) -> (i32, i32) {
    %c0_i32 = arith.constant 0 : i32
    %c0_i32_0 = arith.constant 0 : i32
    return %arg0, %c0_i32 : i32, i32
  }
}

</mosaic_0001>

<bundles_post_ra>
// kernel: tpu_custom_call.1
= control target key start
LH: loop header
LB: loop body
LE: loop exit
PB: predicated region body
PF: predicated region fallthrough
CT: control target
= control target key end

     0   :  { %v333_v0 = vmov 0.0|0.0   ;;  %vm36_vm0 = vcmask 1046528   ;;  %vm334_vm1 = vmmov 0   ;;  %v335_v6 = vmov 0.0   ;;  %s432_s1 = inlined_call_operand.vmem [shape: f32[31,100], index: 1, kind: input, shape index: {}]   ;;  %s433_s3 = inlined_call_operand.vmem [shape: f32[100,2], index: 3, kind: input, shape index: {}]   ;;  %s434_s0 = inlined_call_operand.vmem [shape: f32[8,31], index: 0, kind: input, shape index: {}]   ;;  %s435_s2 = inlined_call_operand.vmem [shape: f32[1,100], index: 2, kind: input, shape index: {}]   ;;  %s436_s4 = inlined_call_operand.vmem [shape: f32[1,2], index: 4, kind: input, shape index: {}]   ;;  %s437_s5 = inlined_call_operand.vmem [shape: f32[8,2], index: 5, kind: output, shape index: {}]  }
   0x1   :  { %298 = vmatprep.subr.bf16.mxu0 %v333_v0  ;;  %v21_v1 = vld [vmem:[%s432_s1] sm:$0xff]  ;;  %v22_v2 = vld [vmem:[%s432_s1 + $0x8] sm:$0xff]  ;;  %v23_v3 = vld [vmem:[%s432_s1 + $0x10] sm:$0xff]  ;;  %305 = vmatprep.subr.bf16.mxu1 %v333_v0  ;;  %vm336_vm2 = vmmov 1   ;;  %vm32_vm4 = vcmask 252928   ;;  %vm135_vm5 = vcmask 1043456  }
   0x2   :  { %v299_v4 = vpack.c.bf16 %v22_v2, %v21_v1  ;;  %v24_v5 = vld [vmem:[%s432_s1 + $0x18] sm:$0x7f]  ;;  %266 = vmatprep.mubr.msk.f32.mxu0 %vm334_vm1, %v335_v6  ;;  %295 = vmatprep.mubr.msk.f32.mxu1 %vm334_vm1, %v335_v6  ;;  %v111_v7 = vld [vmem:[%s433_s3] sm:$0xff]  ;;  %v112_v8 = vld [vmem:[%s433_s3 + $0x8] sm:$0xff]  ;;  %vm131_vm6 = vcmask 818176   ;;  %vm225_vm7 = vcmask 7168  }
   0x3   :  { %v113_v9 = vld [vmem:[%s433_s3 + $0x10] sm:$0xff]  ;;  %v302_v10 = vpack.c.bf16 %v24_v5, %v23_v3  ;;  %v306_v11 = vpack.c.bf16 %v112_v8, %v111_v7  ;;  %v114_v12 = vld [vmem:[%s433_s3 + $0x18] sm:$0xff]  ;;  %vm303_vm3 = vmpackc.low %vm36_vm0, %vm336_vm2  ;;  %vm227_vm8 = vcmask 15360  }
   0x4   :  { %300 = vmatpush3.bf16.msra.mxu0 %v299_v4  ;;  %v309_v13 = vpack.c.bf16 %v114_v12, %v113_v9  ;;  %v115_v14 = vld [vmem:[%s433_s3 + $0x20] sm:$0xff]  ;;  %v116_v15 = vld [vmem:[%s433_s3 + $0x28] sm:$0xff]  ;;  %v117_v18 = vld [vmem:[%s433_s3 + $0x30] sm:$0xff] }
   0x5   :  { %301 = vmatprep.subr.bf16.mxu0 %v333_v0  ;;  %307 = vmatpush3.bf16.msra.mxu1 %v306_v11  ;;  %v20_v16 = vld [vmem:[%s434_s0] sm:$0xff]  ;;  %v312_v17 = vpack.c.bf16 %v116_v15, %v115_v14  ;;  %v118_v19 = vld [vmem:[%s433_s3 + $0x38] sm:$0xff]  ;;  %v120_v22 = vld [vmem:[%s433_s3 + $0x48] sm:$0xff] }
   0x6   :  { %308 = vmatprep.subr.bf16.mxu1 %v333_v0  ;;  %v315_v20 = vpack.c.bf16 %v118_v19, %v117_v18  ;;  %v119_v21 = vld [vmem:[%s433_s3 + $0x40] sm:$0xff]  ;;  %v121_v24 = vld [vmem:[%s433_s3 + $0x50] sm:$0xff]  ;;  %v122_v25 = vld [vmem:[%s433_s3 + $0x58] sm:$0xff] }
   0x7   :  { %v318_v23 = vpack.c.bf16 %v120_v22, %v119_v21  ;;  %v321_v26 = vpack.c.bf16 %v122_v25, %v121_v24  ;;  %v123_v27 = vld [vmem:[%s433_s3 + $0x60] sm:$0xf]  ;;  %s337_s3 = smov 1  }
   0x8   :  { %304 = vmatpush3.bf16.msk.msra.mxu0 %vm303_vm3, %v302_v10  ;;  %v233_v28 = vld [vmem:[%s435_s2] ss:$0 sm:$0xff]  ;;  %s338_s2 = smov 127  }
   0x9   :  { %310 = vmatpush3.bf16.msra.mxu1 %v309_v13  ;;  %v236_v33 = vld [vmem:[%s436_s4] ss:$0 sm:$0xff] }
   0xa   :  { %311 = vmatprep.subr.bf16.mxu1 %v333_v0 }
   0xb   :  { %267 = vmatmul.mubr.msk.f32.vlgmr.msra.gmra.mrb[0].mxu0 %vm32_vm4, %v20_v16 }
   0xd   :  { %313 = vmatpush3.bf16.msra.mxu1 %v312_v17 }
   0xe   :  { %314 = vmatprep.subr.bf16.mxu1 %v333_v0 }
  0x11   :  { %316 = vmatpush3.bf16.msra.mxu1 %v315_v20 }
  0x12   :  { %317 = vmatprep.subr.bf16.mxu1 %v333_v0 }
  0x15   :  { %319 = vmatpush3.bf16.msra.mxu1 %v318_v23 }
  0x16   :  { %320 = vmatprep.subr.bf16.mxu1 %v333_v0 }
  0x19   :  { %322 = vmatpush3.bf16.msra.mxu1 %v321_v26 }
  0x1a   :  { %293 = vmatprep.subr.mxu1 %v335_v6 }
  0x1d   :  { %294 = vmatpush3.msk.msra.mxu1 %vm135_vm5, %v123_v27 }
  0xde   :  { %v106_v29 = vpop.f32.mrb[0].mxu0 }
  0xdf   :  { %v107_v30 = vadd.f32 %v233_v28, %v106_v29  ;;  %v268_v31 = vpop.f32.mrb[1].mxu0 }
  0xe1   :  { %v110_v32 = vmax.f32 %v107_v30, 0.0 }
  0xe3   :  { %296 = vmatmul.mubr.msk.f32.vlgmr.msra.gmra.mrb[0].mxu1 %vm131_vm6, %v110_v32 }
 0x1b6   :  { %v205_v34 = vpop.f32.mrb[0].mxu1 }
 0x1b7   :  { %v206_v35 = vadd.f32 %v236_v33, %v205_v34  ;;  %v297_v36 = vpop.f32.mrb[1].mxu1 }
 0x1b9   :  { %210 = vrot.lane.b32.xlu0 %v206_v35, %s337_s3 }
 0x22b   :  { %v211_v37 = vpop.permute.xlu0 %210 }
 0x22c   :  { %v213_v38 = vsub.f32 %v206_v35, %v211_v37 }
 0x22e   :  { %v214_v39 = vsub.f32 0.0, %v213_v38 }
 0x230   :  { %v215_v40 = vmul.f32 1.442695, %v214_v39 }
 0x232   :  { %329 = vpow2.f32 %v215_v40 }
 0x23c   :  { %v330_v41 = vpop.eup %329 }
 0x23d   :  { %v217_v42 = vadd.f32 1.0, %v330_v41 }
 0x23f   :  { %331 = vrcp.f32 %v217_v42 }
 0x249   :  { %v332_v43 = vpop.eup %331 }
 0x24a   :  { %v220_v44 = vsub.f32 1.0, %v332_v43 }
 0x24c   :  { %222 = vrot.lane.b32.xlu0 %v220_v44, %s338_s2 }
 0x2be   :  { %v223_v45 = vpop.permute.xlu0 %222 }
 0x2bf   :  { %v226_v46 = vsel %vm225_vm7, %v223_v45, %v332_v43 }
 0x2c0   :  { %228 = vst.msk [vmem:[%s437_s5] sm:$0xff] %vm227_vm8, %v226_v46 }

</bundles_post_ra>
